<compile_context>
chip_gen: v5e
topology: v5e:2x2
jax: 0.10.0
libtpu: 0.0.40
codegen_flags: <defaults>
</compile_context>

<pallas_src>
import functools

import jax
import jax.numpy as jnp
import numpy as np
from jax.experimental import pallas as pl
from jax.experimental.pallas import tpu as pltpu

WIDTH_RP = 7      # hidden width of RP_layers
WIDTH_G = 9       # hidden width of G_layers
SLAB_LANES = 128  # one lane tile; every weight fits in <=128 columns


def _pad8(r):
    return ((r + 7) // 8) * 8


# ----------------------------------------------------------------------------
# Host-side (once per parameter set): fold commuting weights and pack everything
# into a single (rows, 128) f32 slab so the kernel receives ONE weight DMA.
# ----------------------------------------------------------------------------
def pack_params(params, M):
    HIGH = jax.lax.Precision.HIGHEST
    w1, b1, w2, b2, w3, b3, v1, c1, v2, c2, v3, c3 = params

    # Exact folds (E acts on nodes, w1/w3/v1 on features -> they commute):
    W31 = jnp.dot(w3, w1, precision=HIGH)        # (7, 7)  RP iterations >= 1
    b31 = jnp.dot(b3, w1, precision=HIGH)        # (1, 7)  paired with rowsum(E)
    W3V1 = jnp.dot(w3, v1, precision=HIGH)       # (7, 9)  readout from hidden h
    c1f = jnp.dot(b3, v1, precision=HIGH) + c1   # (1, 9)

    offsets = {}
    blocks = []
    row = 0
    for name, m in (("w1", w1), ("w2", w2), ("W31", W31),
                    ("W3V1", W3V1), ("v2", v2), ("v3", v3)):
        r, c = m.shape
        blk = jnp.zeros((_pad8(r), SLAB_LANES), jnp.float32).at[:r, :c].set(m)
        blocks.append(blk)
        offsets[name] = row
        row += blk.shape[0]

    bias_rows = (("b1", b1), ("b2", b2), ("b31", b31),
                 ("c1f", c1f), ("c2", c2), ("c3", c3))
    bias_blk = jnp.zeros((_pad8(len(bias_rows)), SLAB_LANES), jnp.float32)
    for i, (name, b) in enumerate(bias_rows):
        bias_blk = bias_blk.at[i, : b.shape[1]].set(b[0])
        offsets[name] = row + i
    blocks.append(bias_blk)

    return jnp.concatenate(blocks, axis=0), offsets


# ----------------------------------------------------------------------------
# Pallas kernel: T rounds of RP message passing (folded) + G readout + sigmoid
# + in-kernel label_idx gather.  Whole problem fits in VMEM -> no grid.
# ----------------------------------------------------------------------------
def matchnet_kernel(score_ref, edges_ref, labels_ref, slab_ref, out_ref,
                    *, depth_T, N, M, L, off):
    s0 = score_ref[...]                # (N, M) f32
    E = edges_ref[...]                 # (N, N) f32
    labels = labels_ref[...]           # (1, L) int32

    # Static slices of the parameter slab (static offsets -> cheap vector loads).
    w1 = slab_ref[off["w1"]:off["w1"] + M, 0:WIDTH_RP]              # (M, 7)
    w2 = slab_ref[off["w2"]:off["w2"] + WIDTH_RP, 0:WIDTH_RP]       # (7, 7)
    W31 = slab_ref[off["W31"]:off["W31"] + WIDTH_RP, 0:WIDTH_RP]    # (7, 7)
    W3V1 = slab_ref[off["W3V1"]:off["W3V1"] + WIDTH_RP, 0:WIDTH_G]  # (7, 9)
    v2 = slab_ref[off["v2"]:off["v2"] + WIDTH_G, 0:WIDTH_G]         # (9, 9)
    v3 = slab_ref[off["v3"]:off["v3"] + WIDTH_G, 0:1]               # (9, 1)
    b1 = slab_ref[off["b1"]:off["b1"] + 1, 0:WIDTH_RP]              # (1, 7)
    b2 = slab_ref[off["b2"]:off["b2"] + 1, 0:WIDTH_RP]              # (1, 7)
    b31 = slab_ref[off["b31"]:off["b31"] + 1, 0:WIDTH_RP]           # (1, 7)
    c1f = slab_ref[off["c1f"]:off["c1f"] + 1, 0:WIDTH_G]            # (1, 9)
    c2 = slab_ref[off["c2"]:off["c2"] + 1, 0:WIDTH_G]               # (1, 9)
    c3 = slab_ref[off["c3"]:off["c3"] + 1, 0:1]                     # (1, 1)

    dot = functools.partial(jnp.dot, preferred_element_type=jnp.float32)

    # Hoisted once: bias broadcasts + rowsum(E)-folded b3 term (not re-emitted
    # inside the static unroll).
    rowsum = jnp.sum(E, axis=1, keepdims=True)                 # (N, 1)
    bias_it0 = jnp.broadcast_to(b1, (N, WIDTH_RP))             # (N, 7)
    bias_loop = rowsum * b31 + b1                              # (N, 7)
    bias_h2 = jnp.broadcast_to(b2, (N, WIDTH_RP))              # (N, 7)

    # ---- RP iteration 0 (operates on the raw input scores) -----------------
    agg = dot(E, s0)                                           # (N, M)
    h = jnp.maximum(dot(agg, w1) + bias_it0, 0.0)              # (N, 7)
    h = jnp.maximum(dot(h, w2) + bias_h2, 0.0)                 # (N, 7)

    # ---- RP iterations 1..T-1, folded into the 7-wide hidden space ---------
    #   E @ (h @ w3 + b3) @ w1 == (E @ h) @ (w3 @ w1) + rowsum(E) * (b3 @ w1)
    for _ in range(depth_T - 1):                               # static unroll
        aggh = dot(E, h)                                       # (N, 7)
        h = jnp.maximum(dot(aggh, W31) + bias_loop, 0.0)       # (N, 7)
        h = jnp.maximum(dot(h, w2) + bias_h2, 0.0)             # (N, 7)

    # ---- G readout (final w3 folded into v1): per-node logit + sigmoid -----
    g = jnp.maximum(dot(h, W3V1) + c1f, 0.0)                   # (N, 9)
    g = jnp.maximum(dot(g, v2) + c2, 0.0)                      # (N, 9)
    pred = jax.nn.sigmoid(dot(g, v3) + c3)                     # (N, 1)

    # ---- In-kernel gather of label_idx rows -> lane-dense (1, L) output ----
    node_iota = jax.lax.broadcasted_iota(jnp.int32, (N, L), 0)
    sel = (node_iota == labels).astype(jnp.float32)            # one-hot columns
    out_ref[...] = jnp.sum(pred * sel, axis=0, keepdims=True)  # (1, L)


# ----------------------------------------------------------------------------
# Wrapper: pack params (fused under jit), single pallas_call, no follow-up
# XLA gather.
# ----------------------------------------------------------------------------
@functools.partial(jax.jit, static_argnames=("depth_T",))
def matchnet_forward(score, edges, label_idx, params, depth_T):
    assert depth_T >= 1, "this kernel implements the forward for depth_T >= 1"
    N, M = score.shape
    L = label_idx.shape[0]

    slab, off = pack_params(params, M)
    labels2d = label_idx.astype(jnp.int32).reshape(1, L)

    kernel = functools.partial(matchnet_kernel, depth_T=depth_T,
                               N=N, M=M, L=L, off=off)
    out = pl.pallas_call(
        kernel,
        out_shape=jax.ShapeDtypeStruct((1, L), jnp.float32),
        in_specs=[pl.BlockSpec(memory_space=pltpu.MemorySpace.VMEM)] * 4,
        out_specs=pl.BlockSpec(memory_space=pltpu.MemorySpace.VMEM),
    )(score, edges, labels2d, slab)
    return out[0]                       # (L,) prediction per queried label


# ----------------------------------------------------------------------------
# Pure-JAX reference (original, un-folded math) for the correctness check.
# ----------------------------------------------------------------------------
def matchnet_reference(score, edges, label_idx, params, depth_T):
    HIGH = jax.lax.Precision.HIGHEST
    w1, b1, w2, b2, w3, b3, v1, c1, v2, c2, v3, c3 = params
    s = score
    for _ in range(depth_T):
        agg = jnp.dot(edges, s, precision=HIGH)
        h = jnp.maximum(jnp.dot(agg, w1, precision=HIGH) + b1, 0.0)
        h = jnp.maximum(jnp.dot(h, w2, precision=HIGH) + b2, 0.0)
        s = jnp.dot(h, w3, precision=HIGH) + b3
    g = jnp.maximum(jnp.dot(s, v1, precision=HIGH) + c1, 0.0)
    g = jnp.maximum(jnp.dot(g, v2, precision=HIGH) + c2, 0.0)
    logit = jnp.dot(g, v3, precision=HIGH) + c3
    return jax.nn.sigmoid(logit)[label_idx, 0]


# ----------------------------------------------------------------------------
def init_params(key, M, width_RP=WIDTH_RP, width_G=WIDTH_G):
    ks = jax.random.split(key, 12)

    def lin(kw, kb, fan_in, fan_out):
        s = 1.0 / np.sqrt(fan_in)
        w = jax.random.uniform(kw, (fan_in, fan_out), jnp.float32, -s, s)
        b = jax.random.uniform(kb, (1, fan_out), jnp.float32, -s, s)
        return w, b

    w1, b1 = lin(ks[0], ks[1], M, width_RP)
    w2, b2 = lin(ks[2], ks[3], width_RP, width_RP)
    w3, b3 = lin(ks[4], ks[5], width_RP, M)
    v1, c1 = lin(ks[6], ks[7], M, width_G)
    v2, c2 = lin(ks[8], ks[9], width_G, width_G)
    v3, c3 = lin(ks[10], ks[11], width_G, 1)
    return (w1, b1, w2, b2, w3, b3, v1, c1, v2, c2, v3, c3)


if __name__ == "__main__":
    # Small shapes implied by the forward: N graph nodes, M-dim score features.
    N, M = 16, 8
    depth_T = 3                 # MatchNet(depth_T=3, N=16, M=8)

    key = jax.random.PRNGKey(0)
    k_score, k_edges, k_params = jax.random.split(key, 3)

    score = jax.random.normal(k_score, (N, M), jnp.float32)
    # Dense adjacency, row-normalized so repeated propagation stays stable.
    edges_raw = (jax.random.uniform(k_edges, (N, N)) > 0.5).astype(jnp.float32)
    edges = edges_raw / jnp.maximum(edges_raw.sum(axis=1, keepdims=True), 1.0)
    label_idx = jnp.array([0, 3, 7, 12], dtype=jnp.int32)

    params = init_params(k_params, M)

    pred = matchnet_forward(score, edges, label_idx, params, depth_T=depth_T)
    pred = jax.block_until_ready(pred)

    ref = matchnet_reference(score, edges, label_idx, params, depth_T)
    # Tolerance leaves headroom for the (exact-in-math) re-association of the
    # folded weights vs. the un-folded reference, while still catching any
    # semantic error (those would be O(0.1) on sigmoid outputs).
    np.testing.assert_allclose(np.asarray(pred), np.asarray(ref),
                               rtol=1e-4, atol=1e-4)
    print("KERNEL_OK")
</pallas_src>

<mosaic_0001>
module attributes {stable_mosaic.version = 11 : i64} {
  func.func @matchnet_kernel(%arg0: memref<16x8xf32, #tpu.memory_space<vmem>>, %arg1: memref<16x16xf32, #tpu.memory_space<vmem>>, %arg2: memref<1x4xi32, #tpu.memory_space<vmem>>, %arg3: memref<72x128xf32, #tpu.memory_space<vmem>>, %arg4: memref<1x4xf32, #tpu.memory_space<vmem>>) attributes {dimension_semantics = [], scalar_prefetch = 0 : i64, scratch_operands = 0 : i64, tpu.core_type = #tpu.core_type<tc>} {
    %c0 = arith.constant 0 : index
    %c0_0 = arith.constant 0 : index
    %0 = vector.load %arg0[%c0, %c0_0] : memref<16x8xf32, #tpu.memory_space<vmem>>, vector<16x8xf32>
    %c0_1 = arith.constant 0 : index
    %c0_2 = arith.constant 0 : index
    %1 = vector.load %arg1[%c0_1, %c0_2] : memref<16x16xf32, #tpu.memory_space<vmem>>, vector<16x16xf32>
    %c0_3 = arith.constant 0 : index
    %c0_4 = arith.constant 0 : index
    %2 = vector.load %arg2[%c0_3, %c0_4] : memref<1x4xi32, #tpu.memory_space<vmem>>, vector<1x4xi32>
    %c0_5 = arith.constant 0 : index
    %c0_6 = arith.constant 0 : index
    %3 = vector.load %arg3[%c0_5, %c0_6] : memref<72x128xf32, #tpu.memory_space<vmem>>, vector<8x7xf32>
    %c8 = arith.constant 8 : index
    %c0_7 = arith.constant 0 : index
    %4 = vector.load %arg3[%c8, %c0_7] : memref<72x128xf32, #tpu.memory_space<vmem>>, vector<7x7xf32>
    %c16 = arith.constant 16 : index
    %c0_8 = arith.constant 0 : index
    %5 = vector.load %arg3[%c16, %c0_8] : memref<72x128xf32, #tpu.memory_space<vmem>>, vector<7x7xf32>
    %c24 = arith.constant 24 : index
    %c0_9 = arith.constant 0 : index
    %6 = vector.load %arg3[%c24, %c0_9] : memref<72x128xf32, #tpu.memory_space<vmem>>, vector<7x9xf32>
    %c32 = arith.constant 32 : index
    %c0_10 = arith.constant 0 : index
    %7 = vector.load %arg3[%c32, %c0_10] : memref<72x128xf32, #tpu.memory_space<vmem>>, vector<9x9xf32>
    %c48 = arith.constant 48 : index
    %c0_11 = arith.constant 0 : index
    %8 = vector.load %arg3[%c48, %c0_11] : memref<72x128xf32, #tpu.memory_space<vmem>>, vector<9x1xf32>
    %c64 = arith.constant 64 : index
    %c0_12 = arith.constant 0 : index
    %9 = vector.load %arg3[%c64, %c0_12] : memref<72x128xf32, #tpu.memory_space<vmem>>, vector<1x7xf32>
    %c65 = arith.constant 65 : index
    %c0_13 = arith.constant 0 : index
    %10 = vector.load %arg3[%c65, %c0_13] : memref<72x128xf32, #tpu.memory_space<vmem>>, vector<1x7xf32>
    %c66 = arith.constant 66 : index
    %c0_14 = arith.constant 0 : index
    %11 = vector.load %arg3[%c66, %c0_14] : memref<72x128xf32, #tpu.memory_space<vmem>>, vector<1x7xf32>
    %c67 = arith.constant 67 : index
    %c0_15 = arith.constant 0 : index
    %12 = vector.load %arg3[%c67, %c0_15] : memref<72x128xf32, #tpu.memory_space<vmem>>, vector<1x9xf32>
    %c68 = arith.constant 68 : index
    %c0_16 = arith.constant 0 : index
    %13 = vector.load %arg3[%c68, %c0_16] : memref<72x128xf32, #tpu.memory_space<vmem>>, vector<1x9xf32>
    %c69 = arith.constant 69 : index
    %c0_17 = arith.constant 0 : index
    %14 = vector.load %arg3[%c69, %c0_17] : memref<72x128xf32, #tpu.memory_space<vmem>>, vector<1x1xf32>
    %cst = arith.constant dense<0.000000e+00> : vector<16xf32>
    %15 = vector.multi_reduction <add>, %1, %cst [1] : vector<16x16xf32> to vector<16xf32>
    %16 = vector.shape_cast %15 : vector<16xf32> to vector<16x1xf32>
    %17 = vector.shape_cast %9 : vector<1x7xf32> to vector<1x7xf32>
    %18 = vector.broadcast %17 : vector<1x7xf32> to vector<16x7xf32>
    %19 = vector.broadcast %16 : vector<16x1xf32> to vector<16x7xf32>
    %20 = vector.broadcast %11 : vector<1x7xf32> to vector<16x7xf32>
    %21 = arith.mulf %19, %20 : vector<16x7xf32>
    %22 = vector.broadcast %9 : vector<1x7xf32> to vector<16x7xf32>
    %23 = arith.addf %21, %22 : vector<16x7xf32>
    %24 = vector.shape_cast %10 : vector<1x7xf32> to vector<1x7xf32>
    %25 = vector.broadcast %24 : vector<1x7xf32> to vector<16x7xf32>
    %cst_18 = arith.constant dense<0.000000e+00> : vector<16x8xf32>
    %26 = tpu.matmul %1, %0, %cst_18 {dimension_numbers = #tpu.dot_dimension_numbers<[1], [0], [0], [1], [0, 0, 1, 1], [], []>} : vector<16x16xf32>, vector<16x8xf32>, vector<16x8xf32> -> vector<16x8xf32>
    %cst_19 = arith.constant dense<0.000000e+00> : vector<16x7xf32>
    %27 = tpu.matmul %26, %3, %cst_19 {dimension_numbers = #tpu.dot_dimension_numbers<[1], [0], [0], [1], [0, 0, 1, 1], [], []>} : vector<16x8xf32>, vector<8x7xf32>, vector<16x7xf32> -> vector<16x7xf32>
    %28 = arith.addf %27, %18 : vector<16x7xf32>
    %cst_20 = arith.constant 0.000000e+00 : f32
    %29 = vector.broadcast %cst_20 : f32 to vector<16x7xf32>
    %30 = arith.maximumf %28, %29 : vector<16x7xf32>
    %cst_21 = arith.constant dense<0.000000e+00> : vector<16x7xf32>
    %31 = tpu.matmul %30, %4, %cst_21 {dimension_numbers = #tpu.dot_dimension_numbers<[1], [0], [0], [1], [0, 0, 1, 1], [], []>} : vector<16x7xf32>, vector<7x7xf32>, vector<16x7xf32> -> vector<16x7xf32>
    %32 = arith.addf %31, %25 : vector<16x7xf32>
    %cst_22 = arith.constant 0.000000e+00 : f32
    %33 = vector.broadcast %cst_22 : f32 to vector<16x7xf32>
    %34 = arith.maximumf %32, %33 : vector<16x7xf32>
    %cst_23 = arith.constant dense<0.000000e+00> : vector<16x7xf32>
    %35 = tpu.matmul %1, %34, %cst_23 {dimension_numbers = #tpu.dot_dimension_numbers<[1], [0], [0], [1], [0, 0, 1, 1], [], []>} : vector<16x16xf32>, vector<16x7xf32>, vector<16x7xf32> -> vector<16x7xf32>
    %cst_24 = arith.constant dense<0.000000e+00> : vector<16x7xf32>
    %36 = tpu.matmul %35, %5, %cst_24 {dimension_numbers = #tpu.dot_dimension_numbers<[1], [0], [0], [1], [0, 0, 1, 1], [], []>} : vector<16x7xf32>, vector<7x7xf32>, vector<16x7xf32> -> vector<16x7xf32>
    %37 = arith.addf %36, %23 : vector<16x7xf32>
    %cst_25 = arith.constant 0.000000e+00 : f32
    %38 = vector.broadcast %cst_25 : f32 to vector<16x7xf32>
    %39 = arith.maximumf %37, %38 : vector<16x7xf32>
    %cst_26 = arith.constant dense<0.000000e+00> : vector<16x7xf32>
    %40 = tpu.matmul %39, %4, %cst_26 {dimension_numbers = #tpu.dot_dimension_numbers<[1], [0], [0], [1], [0, 0, 1, 1], [], []>} : vector<16x7xf32>, vector<7x7xf32>, vector<16x7xf32> -> vector<16x7xf32>
    %41 = arith.addf %40, %25 : vector<16x7xf32>
    %cst_27 = arith.constant 0.000000e+00 : f32
    %42 = vector.broadcast %cst_27 : f32 to vector<16x7xf32>
    %43 = arith.maximumf %41, %42 : vector<16x7xf32>
    %cst_28 = arith.constant dense<0.000000e+00> : vector<16x7xf32>
    %44 = tpu.matmul %1, %43, %cst_28 {dimension_numbers = #tpu.dot_dimension_numbers<[1], [0], [0], [1], [0, 0, 1, 1], [], []>} : vector<16x16xf32>, vector<16x7xf32>, vector<16x7xf32> -> vector<16x7xf32>
    %cst_29 = arith.constant dense<0.000000e+00> : vector<16x7xf32>
    %45 = tpu.matmul %44, %5, %cst_29 {dimension_numbers = #tpu.dot_dimension_numbers<[1], [0], [0], [1], [0, 0, 1, 1], [], []>} : vector<16x7xf32>, vector<7x7xf32>, vector<16x7xf32> -> vector<16x7xf32>
    %46 = arith.addf %45, %23 : vector<16x7xf32>
    %cst_30 = arith.constant 0.000000e+00 : f32
    %47 = vector.broadcast %cst_30 : f32 to vector<16x7xf32>
    %48 = arith.maximumf %46, %47 : vector<16x7xf32>
    %cst_31 = arith.constant dense<0.000000e+00> : vector<16x7xf32>
    %49 = tpu.matmul %48, %4, %cst_31 {dimension_numbers = #tpu.dot_dimension_numbers<[1], [0], [0], [1], [0, 0, 1, 1], [], []>} : vector<16x7xf32>, vector<7x7xf32>, vector<16x7xf32> -> vector<16x7xf32>
    %50 = arith.addf %49, %25 : vector<16x7xf32>
    %cst_32 = arith.constant 0.000000e+00 : f32
    %51 = vector.broadcast %cst_32 : f32 to vector<16x7xf32>
    %52 = arith.maximumf %50, %51 : vector<16x7xf32>
    %cst_33 = arith.constant dense<0.000000e+00> : vector<16x9xf32>
    %53 = tpu.matmul %52, %6, %cst_33 {dimension_numbers = #tpu.dot_dimension_numbers<[1], [0], [0], [1], [0, 0, 1, 1], [], []>} : vector<16x7xf32>, vector<7x9xf32>, vector<16x9xf32> -> vector<16x9xf32>
    %54 = vector.broadcast %12 : vector<1x9xf32> to vector<16x9xf32>
    %55 = arith.addf %53, %54 : vector<16x9xf32>
    %cst_34 = arith.constant 0.000000e+00 : f32
    %56 = vector.broadcast %cst_34 : f32 to vector<16x9xf32>
    %57 = arith.maximumf %55, %56 : vector<16x9xf32>
    %cst_35 = arith.constant dense<0.000000e+00> : vector<16x9xf32>
    %58 = tpu.matmul %57, %7, %cst_35 {dimension_numbers = #tpu.dot_dimension_numbers<[1], [0], [0], [1], [0, 0, 1, 1], [], []>} : vector<16x9xf32>, vector<9x9xf32>, vector<16x9xf32> -> vector<16x9xf32>
    %59 = vector.broadcast %13 : vector<1x9xf32> to vector<16x9xf32>
    %60 = arith.addf %58, %59 : vector<16x9xf32>
    %cst_36 = arith.constant 0.000000e+00 : f32
    %61 = vector.broadcast %cst_36 : f32 to vector<16x9xf32>
    %62 = arith.maximumf %60, %61 : vector<16x9xf32>
    %cst_37 = arith.constant dense<0.000000e+00> : vector<16x1xf32>
    %63 = tpu.matmul %62, %8, %cst_37 {dimension_numbers = #tpu.dot_dimension_numbers<[1], [0], [0], [1], [0, 0, 1, 1], [], []>} : vector<16x9xf32>, vector<9x1xf32>, vector<16x1xf32> -> vector<16x1xf32>
    %64 = vector.broadcast %14 : vector<1x1xf32> to vector<16x1xf32>
    %65 = arith.addf %63, %64 : vector<16x1xf32>
    %66 = arith.negf %65 : vector<16x1xf32>
    %67 = math.exp %66 : vector<16x1xf32>
    %cst_38 = arith.constant 1.000000e+00 : f32
    %68 = vector.broadcast %cst_38 : f32 to vector<16x1xf32>
    %69 = arith.addf %68, %67 : vector<16x1xf32>
    %70 = arith.divf %68, %69 : vector<16x1xf32>
    %71 = tpu.iota {dimensions = array<i32: 0>} : vector<16x4xi32>
    %72 = vector.broadcast %2 : vector<1x4xi32> to vector<16x4xi32>
    %73 = arith.cmpi eq, %71, %72 : vector<16x4xi32>
    %74 = arith.extui %73 : vector<16x4xi1> to vector<16x4xi32>
    %75 = arith.sitofp %74 : vector<16x4xi32> to vector<16x4xf32>
    %76 = vector.broadcast %70 : vector<16x1xf32> to vector<16x4xf32>
    %77 = arith.mulf %76, %75 : vector<16x4xf32>
    %cst_39 = arith.constant dense<0.000000e+00> : vector<4xf32>
    %78 = vector.multi_reduction <add>, %77, %cst_39 [0] : vector<16x4xf32> to vector<4xf32>
    %79 = vector.shape_cast %78 : vector<4xf32> to vector<1x4xf32>
    %c0_40 = arith.constant 0 : index
    %c0_41 = arith.constant 0 : index
    %80 = vector.load %arg4[%c0_40, %c0_41] : memref<1x4xf32, #tpu.memory_space<vmem>>, vector<1x4xf32>
    tpu.vector_store %arg4[%c0_40, %c0_41], %79 {strides = array<i32>} : memref<1x4xf32, #tpu.memory_space<vmem>>, vector<1x4xf32>,
    return
  }
}

</mosaic_0001>

<bundles_post_ra>
// kernel: matchnet_forward.1
= control target key start
LH: loop header
LB: loop body
LE: loop exit
PB: predicated region body
PF: predicated region fallthrough
CT: control target
= control target key end

     0   :  { %vm37_vm0 = vcmask 130048   ;;  %s734_s0 = inlined_call_operand.vmem [shape: f32[16,8], index: 0, kind: input, shape index: {}]   ;;  %s735_s1 = inlined_call_operand.vmem [shape: f32[16,16], index: 1, kind: input, shape index: {}]   ;;  %s736_s2 = inlined_call_operand.vmem [shape: s32[1,4], index: 2, kind: input, shape index: {}]   ;;  %s737_s3 = inlined_call_operand.vmem [shape: f32[72,128], index: 3, kind: input, shape index: {}]   ;;  %s738_s4 = inlined_call_operand.hbm [shape: f32[1,4], index: 4, kind: output, shape index: {}]  }
   0x1   :  { %v19_v0 = vld [vmem:[%s734_s0 + $0x8] sm:$0xff]  ;;  %v18_v1 = vld [vmem:[%s734_s0] sm:$0xff] }
   0x2   :  { %71 = vmatpush.msra.mxu0 %v19_v0  ;;  %v633_v2 = vld [vmem:[%s735_s1] sm:$0xff] }
   0x4   :  { %72 = vmatpush.msra.mxu0 %v18_v1 }
   0x5   :  { %9 = vsyncpa [#allocation3], 0  ;;  %514 = vmatmul.msk.f32.vlgmr.msra.gmra.mxu0 %vm37_vm0, %v633_v2  ;;  %v640_v3 = vld [vmem:[%s735_s1 + $0x8] sm:$0xff]  ;;  %v23_v4 = vld [vmem:[%s737_s3] sm:$0xff]  ;;  %vm80_vm1 = vcmask 64512   ;;  %vm119_vm2 = vcmask 1046528  }
   0x6   :  { %102 = vmatpush.msra.mxu1 %v23_v4  ;;  %v24_v7 = vld [vmem:[%s737_s3 + $0x8] sm:$0x7f]  ;;  %v555_v8 = vld [vmem:[%s737_s3 + $0x40] ss:$0 sm:$0xff]  ;;  %vm112_vm3 = vcmask 56320   ;;  %v38_v23 = vsel %vm37_vm0, %v633_v2, 0.0 }
   0x7   :  { %518 = vmatpush.msk.msra.mxu2 %vm119_vm2, %v24_v7  ;;  %v25_v15 = vld [vmem:[%s737_s3 + $0x10] sm:$0x7f]  ;;  %v665_v17 = vld [vmem:[%s737_s3 + $0x41] ss:$0 sm:$0xff]  ;;  %39 = vadd.xlane.f32.xlu0 %v38_v23  ;;  %v41_v24 = vsel %vm37_vm0, %v640_v3, 0.0  ;;  %vm364_vm4 = vcmask 1040384  }
   0x8   :  { %523 = vmatpush.msk.msrb.mxu1 %vm119_vm2, %v25_v15  ;;  %v557_v28 = vld [vmem:[%s737_s3 + $0x42] ss:$0 sm:$0xff]  ;;  %v26_v54 = vld [vmem:[%s737_s3 + $0x18] sm:$0x7f]  ;;  %v28_v61 = vld [vmem:[%s737_s3 + $0x28] sm:$0x1] }
   0x9   :  { %526 = vmatpush.msk.msrb.mxu2 %vm119_vm2, %v24_v7  ;;  %v27_v62 = vld [vmem:[%s737_s3 + $0x20] sm:$0xff]  ;;  %vm357_vm5 = vcmask 72704   ;;  %s598_s23 = smov [#allocation2]   ;;  %s505_s1 = sshll.u32 %s738_s4, 4  ;;  %s506_s1 = int_to_ptr.hbm [resolvable:$true] %s505_s1 }
   0xa   :  { %v558_v63 = vld [vmem:[%s737_s3 + $0x43] ss:$0 sm:$0xff] }
   0xd   :  { %515 = vmatmul.msk.f32.gmra.mxu0 %vm37_vm0, %v640_v3 }
   0xf   :  { %42 = vadd.xlane.f32.xlu0 %v41_v24 }
  0x7a   :  { %v40_v27 = vpop.xlane.xlu0 %39 }
  0x7b   :  { %v46_v29 = vmul.f32 %v557_v28, %v40_v27 }
  0x7d   :  { %v48_v30 = vadd.f32 %v555_v8, %v46_v29 }
  0x82   :  { %v74_v5 = vpop.f32.mrf.mxu0  ;;  %v43_v31 = vpop.xlane.xlu0 %42 }
  0x83   :  { %516 = vmatmul.msk.f32.vlgmr.msra.gmra.mxu1 %vm80_vm1, %v74_v5  ;;  %v47_v34 = vmul.f32 %v557_v28, %v43_v31 }
  0x84   :  { %534 = vmatpush.msk.msra.mxu1 %vm119_vm2, %v24_v7  ;;  %v29_v7 = vld [vmem:[%s737_s3 + $0x30] sm:$0xff] }
  0x85   :  { %v49_v36 = vadd.f32 %v555_v8, %v47_v34 }
  0x8a   :  { %v77_v6 = vpop.f32.mrf.mxu0 }
  0x8b   :  { %517 = vmatmul.msk.f32.gmra.mxu1 %vm80_vm1, %v77_v6  ;;  %v30_v6 = vld [vmem:[%s737_s3 + $0x38] sm:$0x1]  ;;  %vm496_vm1 = vcmask 24576  }
 0x100   :  { %v104_v9 = vpop.f32.mrf.mxu1 }
 0x101   :  { %v105_v10 = vadd.f32 %v555_v8, %v104_v9 }
 0x103   :  { %v110_v11 = vmax.f32 %v105_v10, 0.0 }
 0x105   :  { %519 = vmatmul.msk.f32.vlgmr.msra.gmra.mxu2 %vm112_vm3, %v110_v11 }
 0x106   :  { %537 = vmatpush.msk.msra.mxu2 %vm119_vm2, %v26_v54 }
 0x108   :  { %v107_v12 = vpop.f32.mrf.mxu1 }
 0x109   :  { %v108_v13 = vadd.f32 %v555_v8, %v107_v12  ;;  %v559_v8 = vld [vmem:[%s737_s3 + $0x44] ss:$0 sm:$0xff] }
 0x10b   :  { %v111_v14 = vmax.f32 %v108_v13, 0.0 }
 0x10d   :  { %520 = vmatmul.msk.f32.gmra.mxu2 %vm112_vm3, %v111_v14 }
 0x188   :  { %v140_v16 = vpop.f32.mrf.mxu2 }
 0x189   :  { %v141_v19 = vadd.f32 %v665_v17, %v140_v16  ;;  %v560_v16 = vld [vmem:[%s737_s3 + $0x45] ss:$0 sm:$0xff] }
 0x18b   :  { %v146_v22 = vmax.f32 %v141_v19, 0.0 }
 0x190   :  { %v143_v18 = vpop.f32.mrf.mxu2 }
 0x191   :  { %v144_v20 = vadd.f32 %v665_v17, %v143_v18 }
 0x193   :  { %v147_v21 = vmax.f32 %v144_v20, 0.0 }
 0x195   :  { %162 = vmatpush.msra.mxu3 %v147_v21 }
 0x197   :  { %163 = vmatpush.msra.mxu3 %v146_v22 }
 0x198   :  { %521 = vmatmul.msk.f32.vlgmr.msra.gmra.mxu3 %vm37_vm0, %v633_v2 }
 0x199   :  { %531 = vmatpush.msk.msrb.mxu3 %vm119_vm2, %v25_v15  ;;  %v596_v15 = vmov 0  }
 0x19a   :  { %553 = vset.pattern.permute.xlu1 %v596_v15  ;;  %554 = vset.pattern.permute.xlu0 %v596_v15 }
 0x19b   :  { %543 = vmatpush.msk.msra.mxu3 %vm364_vm4, %v30_v6 }
 0x19d   :  { %418 = vmatpush.msra.mxu3 %v29_v7 }
 0x1a0   :  { %522 = vmatmul.msk.f32.gmra.mxu3 %vm37_vm0, %v640_v3 }
 0x21b   :  { %v165_v25 = vpop.f32.mrf.mxu3 }
 0x21c   :  { %524 = vmatmul.msk.f32.vlgmr.msrb.gmra.mxu1 %vm112_vm3, %v165_v25 }
 0x223   :  { %v168_v26 = vpop.f32.mrf.mxu3 }
 0x224   :  { %525 = vmatmul.msk.f32.gmra.mxu1 %vm112_vm3, %v168_v26 }
 0x299   :  { %v197_v32 = vpop.f32.mrf.mxu1 }
 0x29a   :  { %v198_v33 = vadd.f32 %v197_v32, %v48_v30 }
 0x29c   :  { %v203_v35 = vmax.f32 %v198_v33, 0.0 }
 0x29e   :  { %527 = vmatmul.msk.f32.vlgmr.msrb.gmra.mxu2 %vm112_vm3, %v203_v35 }
 0x2a1   :  { %v200_v37 = vpop.f32.mrf.mxu1 }
 0x2a2   :  { %v201_v38 = vadd.f32 %v200_v37, %v49_v36 }
 0x2a4   :  { %v204_v39 = vmax.f32 %v201_v38, 0.0 }
 0x2a6   :  { %528 = vmatmul.msk.f32.gmra.mxu2 %vm112_vm3, %v204_v39 }
 0x321   :  { %v228_v40 = vpop.f32.mrf.mxu2 }
 0x322   :  { %v229_v42 = vadd.f32 %v665_v17, %v228_v40 }
 0x324   :  { %v234_v45 = vmax.f32 %v229_v42, 0.0 }
 0x329   :  { %v231_v41 = vpop.f32.mrf.mxu2 }
 0x32a   :  { %v232_v43 = vadd.f32 %v665_v17, %v231_v41 }
 0x32c   :  { %v235_v44 = vmax.f32 %v232_v43, 0.0 }
 0x32e   :  { %250 = vmatpush.msrb.mxu0 %v235_v44 }
 0x330   :  { %251 = vmatpush.msrb.mxu0 %v234_v45 }
 0x331   :  { %529 = vmatmul.msk.f32.vlgmr.msrb.gmra.mxu0 %vm37_vm0, %v633_v2 }
 0x332   :  { %540 = vmatpush.msk.msra.mxu0 %vm364_vm4, %v28_v61 }
 0x334   :  { %383 = vmatpush.msra.mxu0 %v27_v62 }
 0x339   :  { %530 = vmatmul.msk.f32.gmra.mxu0 %vm37_vm0, %v640_v3  ;;  %vm486_vm0 = vcmask 31744  }
 0x3ae   :  { %v253_v46 = vpop.f32.mrf.mxu0 }
 0x3af   :  { %532 = vmatmul.msk.f32.vlgmr.msrb.gmra.mxu3 %vm112_vm3, %v253_v46 }
 0x3b6   :  { %v256_v47 = vpop.f32.mrf.mxu0 }
 0x3b7   :  { %533 = vmatmul.msk.f32.gmra.mxu3 %vm112_vm3, %v256_v47  ;;  %v464_v47 = vlaneseq }
 0x432   :  { %v282_v48 = vpop.f32.mrf.mxu3 }
 0x433   :  { %v283_v49 = vadd.f32 %v282_v48, %v48_v30  ;;  %v465_v48 = vshrl.u32 %v464_v47, 7 }
 0x435   :  { %v288_v50 = vmax.f32 %v283_v49, 0.0  ;;  %v561_v49 = vld [vmem:[%s736_s2] ss:$0 sm:$0xff]  ;;  %s503_s2 = sshll.u32 %s598_s23, 4  ;;  %s504_s2 = int_to_ptr.vmem [resolvable:$true] %s503_s2 }
 0x436   :  { %vm468_vm14 = vcmp.eq.s32.totalorder %v465_v48, %v561_v49 }
 0x437   :  { %535 = vmatmul.msk.f32.vlgmr.msra.gmra.mxu1 %vm112_vm3, %v288_v50  ;;  %v466_v50 = vadd.s32 8, %v465_v48 }
 0x439   :  { %vm469_vm15 = vcmp.eq.s32.totalorder %v466_v50, %v561_v49 }
 0x43a   :  { %v285_v51 = vpop.f32.mrf.mxu3 }
 0x43b   :  { %v286_v52 = vadd.f32 %v285_v51, %v49_v36 }
 0x43d   :  { %v289_v53 = vmax.f32 %v286_v52, 0.0  ;;  %v597_v52 = vmov 0.0  }
 0x43e   :  { %v549_v54 = vsel %vm469_vm15, 1.0, %v597_v52 }
 0x43f   :  { %536 = vmatmul.msk.f32.gmra.mxu1 %vm112_vm3, %v289_v53  ;;  %v548_v53 = vsel %vm468_vm14, 1.0, %v597_v52 }
 0x4b4   :  { %v313_v55 = vpop.f32.mrf.mxu1 }
 0x4b5   :  { %v314_v56 = vadd.f32 %v665_v17, %v313_v55 }
 0x4b7   :  { %v319_v57 = vmax.f32 %v314_v56, 0.0 }
 0x4b9   :  { %538 = vmatmul.msk.f32.vlgmr.msra.gmra.mxu2 %vm112_vm3, %v319_v57 }
 0x4bc   :  { %v316_v58 = vpop.f32.mrf.mxu1 }
 0x4bd   :  { %v317_v59 = vadd.f32 %v665_v17, %v316_v58 }
 0x4bf   :  { %v320_v60 = vmax.f32 %v317_v59, 0.0 }
 0x4c1   :  { %539 = vmatmul.msk.f32.gmra.mxu2 %vm112_vm3, %v320_v60 }
 0x53c   :  { %v348_v0 = vpop.f32.mrf.mxu2 }
 0x53d   :  { %v349_v1 = vadd.f32 %v558_v63, %v348_v0 }
 0x53f   :  { %v354_v2 = vmax.f32 %v349_v1, 0.0 }
 0x541   :  { %541 = vmatmul.msk.f32.vlgmr.msra.gmra.mxu0 %vm357_vm5, %v354_v2 }
 0x544   :  { %v351_v3 = vpop.f32.mrf.mxu2 }
 0x545   :  { %v352_v4 = vadd.f32 %v558_v63, %v351_v3 }
 0x547   :  { %v355_v5 = vmax.f32 %v352_v4, 0.0 }
 0x549   :  { %542 = vmatmul.msk.f32.gmra.mxu0 %vm357_vm5, %v355_v5 }
 0x5be   :  { %v385_v9 = vpop.f32.mrf.mxu0 }
 0x5bf   :  { %v386_v10 = vadd.f32 %v559_v8, %v385_v9 }
 0x5c1   :  { %v391_v11 = vmax.f32 %v386_v10, 0.0 }
 0x5c3   :  { %544 = vmatmul.msk.f32.vlgmr.msra.gmra.mxu3 %vm357_vm5, %v391_v11 }
 0x5c6   :  { %v388_v12 = vpop.f32.mrf.mxu0 }
 0x5c7   :  { %v389_v13 = vadd.f32 %v559_v8, %v388_v12 }
 0x5c9   :  { %v392_v14 = vmax.f32 %v389_v13, 0.0 }
 0x5cb   :  { %545 = vmatmul.msk.f32.gmra.mxu3 %vm357_vm5, %v392_v14 }
 0x646   :  { %v420_v17 = vpop.f32.mrf.mxu3 }
 0x647   :  { %v421_v18 = vadd.f32 %v560_v16, %v420_v17 }
 0x649   :  { %v546_v19 = vmul.f32 -1.442695, %v421_v18 }
 0x64b   :  { %562 = vpow2.f32 %v546_v19 }
 0x64e   :  { %v423_v20 = vpop.f32.mrf.mxu3 }
 0x64f   :  { %v424_v21 = vadd.f32 %v560_v16, %v423_v20 }
 0x651   :  { %v563_v22 = vpop.eup %562  ;;  %v547_v23 = vmul.f32 -1.442695, %v424_v21 }
 0x652   :  { %v432_v24 = vadd.f32 1.0, %v563_v22 }
 0x653   :  { %564 = vpow2.f32 %v547_v23 }
 0x654   :  { %566 = vrcp.f32 %v432_v24  ;;  %v445_v30 = vand.u32 2147483648, %v432_v24  ;;  %v443_v32 = vand.u32 2147483647, %v432_v24  ;;  %vm439_vm7 = vweird.f32 %v432_v24 }
 0x656   :  { %v446_v35 = vor.u32 1.1754944e-38, %v445_v30  ;;  %vm444_vm9 = vcmp.eq.f32.partialorder %v443_v32, 8.507059e+37 }
 0x659   :  { %v565_v25 = vpop.eup %564 }
 0x65a   :  { %v567_v26 = vpop.eup %566  ;;  %v433_v27 = vadd.f32 1.0, %v565_v25 }
 0x65b   :  { %v435_v28 = vmul.f32 %v567_v26, %v432_v24  ;;  %vm440_vm6 = vweird.f32 %v567_v26 }
 0x65c   :  { %568 = vrcp.f32 %v433_v27  ;;  %vm441_vm8 = vmor %vm439_vm7, %vm440_vm6  ;;  %v460_v40 = vand.u32 2147483648, %v433_v27  ;;  %v458_v42 = vand.u32 2147483647, %v433_v27  ;;  %vm454_vm11 = vweird.f32 %v433_v27 }
 0x65d   :  { %v436_v29 = vsub.f32 1.0, %v435_v28 }
 0x65e   :  { %v461_v44 = vor.u32 1.1754944e-38, %v460_v40  ;;  %vm459_vm13 = vcmp.eq.f32.partialorder %v458_v42, 8.507059e+37 }
 0x65f   :  { %v437_v31 = vmul.f32 %v567_v26, %v436_v29 }
 0x661   :  { %v438_v33 = vadd.f32 %v567_v26, %v437_v31 }
 0x662   :  { %v569_v34 = vpop.eup %568 }
 0x663   :  { %v442_v36 = vsel %vm441_vm8, %v567_v26, %v438_v33  ;;  %v450_v37 = vmul.f32 %v569_v34, %v433_v27  ;;  %vm455_vm10 = vweird.f32 %v569_v34 }
 0x664   :  { %v447_v38 = vsel %vm444_vm9, %v446_v35, %v442_v36  ;;  %vm456_vm12 = vmor %vm454_vm11, %vm455_vm10 }
 0x665   :  { %476 = vperm.xlu1 %553, %v447_v38   ;;  %v451_v39 = vsub.f32 1.0, %v450_v37 }
 0x667   :  { %v452_v41 = vmul.f32 %v569_v34, %v451_v39 }
 0x669   :  { %v453_v43 = vadd.f32 %v569_v34, %v452_v41 }
 0x66b   :  { %v457_v45 = vsel %vm456_vm12, %v569_v34, %v453_v43 }
 0x66c   :  { %v462_v46 = vsel %vm459_vm13, %v461_v44, %v457_v45 }
 0x66d   :  { %481 = vperm.xlu1 %553, %v462_v46  }
 0x6d7   :  { %v477_v51 = vpop.permute.xlu1 %476 }
 0x6d8   :  { %v484_v55 = vmul.f32 %v548_v53, %v477_v51 }
 0x6da   :  { %v487_v58 = vsel %vm486_vm0, %v484_v55, 0.0 }
 0x6df   :  { %v482_v56 = vpop.permute.xlu1 %481 }
 0x6e0   :  { %v485_v57 = vmul.f32 %v549_v54, %v482_v56 }
 0x6e2   :  { %v488_v59 = vsel %vm486_vm0, %v485_v57, 0.0 }
 0x6e3   :  { %v489_v60 = vadd.f32 %v488_v59, %v487_v58 }
 0x6e5   :  { %v490_v61 = vrot.slane %v489_v60, 4 }
 0x6e7   :  { %v491_v62 = vadd.f32 %v490_v61, %v489_v60 }
 0x6e9   :  { %v492_v63 = vrot.slane %v491_v62, 2 }
 0x6eb   :  { %v493_v0 = vadd.f32 %v492_v63, %v491_v62 }
 0x6ed   :  { %v494_v1 = vrot.slane %v493_v0, 1 }
 0x6ef   :  { %v495_v2 = vadd.f32 %v494_v1, %v493_v0 }
 0x6f1   :  { %497 = vst.msk [vmem:[#allocation2] sm:$0x1] %vm496_vm1, %v495_v2 }
 0x6f2   :  { %508 = dma.vmem_to_hbm [thread:$0]  %s504_s2, 16, %s506_s1, [#allocation3]  }
 0x6f3   :  { %594 = dma.done.wait [#allocation3], 16  }
 0x6f4   :  { %595 = vsyncadd [#allocation3], 4294967280 }
 0x6f5   :  { %513 = vsyncpa [#allocation3], 1 }

</bundles_post_ra>
